<compile_context>
chip_gen: v7x
topology: tpu7x:2x2x1
jax: 0.10.0
libtpu: 0.0.40
codegen_flags: <defaults>
</compile_context>

<pallas_src>
import math

import jax
import jax.numpy as jnp
from jax import lax
from jax.experimental import pallas as pl
from jax.experimental.pallas import tpu as pltpu

H = 16      # hidden size (nn.RNN hidden_size)
I = 6       # input size  (nn.RNN input_size)
LANE = 128  # vreg lane width


def _pad_batch(B, T):
    """Smallest B_pad >= B such that T * B_pad is a multiple of LANE."""
    step = LANE // math.gcd(T, LANE)
    return ((B + step - 1) // step) * step


def _pack_params(params):
    """Pack all parameters into one (24, 128) f32 slab (single DMA).

    Layout:
      rows 0:16, cols  0:6   -> w_ih           (H, I)
      rows 0:16, cols  8:24  -> w_hh           (H, H)
      rows 0:16, cols 24:25  -> b_ih + b_hh    (H, 1)
      row  16,   cols  0:16  -> w_fc           (1, H)
      row  16,   col   16    -> b_fc           (1, 1)
    """
    slab = jnp.zeros((24, LANE), jnp.float32)
    slab = slab.at[0:H, 0:I].set(params["w_ih"].astype(jnp.float32))
    slab = slab.at[0:H, 8:8 + H].set(params["w_hh"].astype(jnp.float32))
    slab = slab.at[0:H, 24:25].set(
        (params["b_ih"] + params["b_hh"]).astype(jnp.float32).reshape(H, 1))
    slab = slab.at[H:H + 1, 0:H].set(params["w_fc"].astype(jnp.float32))
    slab = slab.at[H:H + 1, H:H + 1].set(
        params["b_fc"].astype(jnp.float32).reshape(1, 1))
    return slab


def predictor_forward(xs, params):
    """xs: (B, T, 6) float32  ->  (B, T, 1) float32 (matches PyTorch)."""
    B, T, in_dim = xs.shape
    assert in_dim == I
    xs = xs.astype(jnp.float32)

    # Pad batch so T*Bp is lane-dense (multiple of 128); padded columns are
    # computed and simply dropped at the end.
    Bp = _pad_batch(B, T)
    if Bp != B:
        xs = jnp.pad(xs, ((0, Bp - B), (0, 0), (0, 0)))

    # Feature-major column packing: x_cols[i, t*Bp + b] = xs[b, t, i] -> (I, T*Bp)
    x_cols = jnp.transpose(xs, (2, 1, 0)).reshape(I, T * Bp)
    slab = _pack_params(params)

    def kernel(x_ref, p_ref, out_ref, hs_ref):
        # Static slices of the single packed param slab (one-time, off the
        # recurrence chain).
        w_ih = p_ref[0:H, 0:I]            # (H, I)
        w_hh = p_ref[0:H, 8:8 + H]        # (H, H)
        b_rnn = p_ref[0:H, 24:25]         # (H, 1)
        w_fc = p_ref[H:H + 1, 0:H]        # (1, H)
        b_fc = p_ref[H:H + 1, H:H + 1]    # (1, 1)

        # Hoisted input projection + fused RNN bias: ONE matmul for all steps.
        pre = (jnp.dot(w_ih, x_ref[...], preferred_element_type=jnp.float32)
               + b_rnn)                    # (H, T*Bp)

        h = jnp.zeros((H, Bp), jnp.float32)
        # T is static and small: full static unroll; only W_hh@h + tanh sit on
        # the serial dependence chain. Per-step hidden states are stored into
        # VMEM scratch at static offsets (filler under the MXU/EUP stall).
        for t in range(T):
            h = jnp.tanh(pre[:, t * Bp:(t + 1) * Bp]
                         + jnp.dot(w_hh, h,
                                   preferred_element_type=jnp.float32))
            hs_ref[:, t * Bp:(t + 1) * Bp] = h

        # Hoisted FC head: single matmul + bias -> one lane-dense store.
        out_ref[...] = (jnp.dot(w_fc, hs_ref[...],
                                preferred_element_type=jnp.float32)
                        + b_fc)            # (1, T*Bp)

    out_row = pl.pallas_call(
        kernel,
        out_shape=jax.ShapeDtypeStruct((1, T * Bp), jnp.float32),
        in_specs=[
            pl.BlockSpec(memory_space=pltpu.MemorySpace.VMEM),   # x_cols
            pl.BlockSpec(memory_space=pltpu.MemorySpace.VMEM),   # param slab
        ],
        out_specs=pl.BlockSpec(memory_space=pltpu.MemorySpace.VMEM),
        scratch_shapes=[pltpu.VMEM((H, T * Bp), jnp.float32)],   # hidden states
    )(x_cols, slab)

    # out_row[0, t*Bp + b] = y[b, t]  ->  (B, T, 1), dropping padded batch cols.
    y = out_row.reshape(T, Bp)[:, :B]                            # (T, B)
    return jnp.transpose(y)[..., None]                           # (B, T, 1)


def predictor_forward_ref(xs, params):
    """Pure-JAX reference matching torch.nn.RNN(batch_first) + Linear."""
    B, T, _ = xs.shape
    Hh = params["w_hh"].shape[0]
    w_ih, w_hh = params["w_ih"], params["w_hh"]
    b = params["b_ih"] + params["b_hh"]

    def step(h, x_t):
        h_new = jnp.tanh(x_t @ w_ih.T + h @ w_hh.T + b)
        return h_new, h_new

    x_tm = jnp.transpose(xs, (1, 0, 2))                          # (T, B, I)
    _, hs = lax.scan(step, jnp.zeros((B, Hh), jnp.float32), x_tm)
    out = hs @ params["w_fc"].T + params["b_fc"]                 # (T, B, 1)
    return jnp.transpose(out, (1, 0, 2))


def init_params(key, input_size=6, hidden_size=16):
    """Deterministic init matching PyTorch shapes (uniform +/- 1/sqrt(H))."""
    ks = jax.random.split(key, 6)
    bound = 1.0 / jnp.sqrt(jnp.float32(hidden_size))
    u = lambda k, shape, b: jax.random.uniform(k, shape, jnp.float32, -b, b)
    return {
        "w_ih": u(ks[0], (hidden_size, input_size), bound),   # rnn.weight_ih_l0
        "w_hh": u(ks[1], (hidden_size, hidden_size), bound),  # rnn.weight_hh_l0
        "b_ih": u(ks[2], (hidden_size,), bound),              # rnn.bias_ih_l0
        "b_hh": u(ks[3], (hidden_size,), bound),              # rnn.bias_hh_l0
        "w_fc": u(ks[4], (1, hidden_size), bound),            # fc.weight
        "b_fc": u(ks[5], (1,), bound),                        # fc.bias
    }
    # TODO(synk): fit()/Adam/MSELoss are training-time only, not part of forward.


if __name__ == "__main__":
    key = jax.random.PRNGKey(0)
    k_param, k_x = jax.random.split(key)

    B, T = 2, 8              # batch=2, seq=8, input features=6 (from the module)
    params = init_params(k_param, input_size=I, hidden_size=H)
    xs = jax.random.normal(k_x, (B, T, I), jnp.float32)

    out = jax.block_until_ready(predictor_forward(xs, params))
    ref = jax.block_until_ready(predictor_forward_ref(xs, params))

    assert out.shape == (B, T, 1), out.shape
    assert jnp.allclose(out, ref, atol=1e-4, rtol=1e-4), (
        float(jnp.max(jnp.abs(out - ref))))
    print("KERNEL_OK")
</pallas_src>

<mosaic_0001>
module attributes {stable_mosaic.version = 11 : i64} {
  func.func @kernel(%arg0: memref<6x128xf32, #tpu.memory_space<vmem>>, %arg1: memref<24x128xf32, #tpu.memory_space<vmem>>, %arg2: memref<1x128xf32, #tpu.memory_space<vmem>>, %arg3: memref<16x128xf32, #tpu.memory_space<vmem>>) attributes {dimension_semantics = [], scalar_prefetch = 0 : i64, scratch_operands = 1 : i64, tpu.core_type = #tpu.core_type<tc>} {
    %c0 = arith.constant 0 : index
    %c0_0 = arith.constant 0 : index
    %0 = vector.load %arg1[%c0, %c0_0] : memref<24x128xf32, #tpu.memory_space<vmem>>, vector<16x6xf32>
    %c0_1 = arith.constant 0 : index
    %c8 = arith.constant 8 : index
    %1 = vector.load %arg1[%c0_1, %c8] : memref<24x128xf32, #tpu.memory_space<vmem>>, vector<16x16xf32>
    %c0_2 = arith.constant 0 : index
    %c24 = arith.constant 24 : index
    %2 = vector.load %arg1[%c0_2, %c24] : memref<24x128xf32, #tpu.memory_space<vmem>>, vector<16x1xf32>
    %c16 = arith.constant 16 : index
    %c0_3 = arith.constant 0 : index
    %3 = vector.load %arg1[%c16, %c0_3] : memref<24x128xf32, #tpu.memory_space<vmem>>, vector<1x16xf32>
    %c16_4 = arith.constant 16 : index
    %c16_5 = arith.constant 16 : index
    %4 = vector.load %arg1[%c16_4, %c16_5] : memref<24x128xf32, #tpu.memory_space<vmem>>, vector<1x1xf32>
    %c0_6 = arith.constant 0 : index
    %c0_7 = arith.constant 0 : index
    %5 = vector.load %arg0[%c0_6, %c0_7] : memref<6x128xf32, #tpu.memory_space<vmem>>, vector<6x128xf32>
    %cst = arith.constant dense<0.000000e+00> : vector<16x128xf32>
    %6 = tpu.matmul %0, %5, %cst {dimension_numbers = #tpu.dot_dimension_numbers<[1], [0], [0], [1], [0, 0, 1, 1], [], []>} : vector<16x6xf32>, vector<6x128xf32>, vector<16x128xf32> -> vector<16x128xf32>
    %7 = vector.broadcast %2 : vector<16x1xf32> to vector<16x128xf32>
    %8 = arith.addf %6, %7 : vector<16x128xf32>
    %cst_8 = arith.constant 0.000000e+00 : f32
    %9 = vector.broadcast %cst_8 : f32 to vector<16x16xf32>
    %10 = vector.extract_strided_slice %8 {offsets = [0, 0], sizes = [16, 16], strides = [1, 1]} : vector<16x128xf32> to vector<16x16xf32>
    %cst_9 = arith.constant dense<0.000000e+00> : vector<16x16xf32>
    %11 = tpu.matmul %1, %9, %cst_9 {dimension_numbers = #tpu.dot_dimension_numbers<[1], [0], [0], [1], [0, 0, 1, 1], [], []>} : vector<16x16xf32>, vector<16x16xf32>, vector<16x16xf32> -> vector<16x16xf32>
    %12 = arith.addf %10, %11 : vector<16x16xf32>
    %13 = math.tanh %12 : vector<16x16xf32>
    %c0_10 = arith.constant 0 : index
    %c0_11 = arith.constant 0 : index
    %14 = vector.load %arg3[%c0_10, %c0_11] : memref<16x128xf32, #tpu.memory_space<vmem>>, vector<16x16xf32>
    tpu.vector_store %arg3[%c0_10, %c0_11], %13 {strides = array<i32>} : memref<16x128xf32, #tpu.memory_space<vmem>>, vector<16x16xf32>,
    %15 = vector.extract_strided_slice %8 {offsets = [0, 16], sizes = [16, 16], strides = [1, 1]} : vector<16x128xf32> to vector<16x16xf32>
    %cst_12 = arith.constant dense<0.000000e+00> : vector<16x16xf32>
    %16 = tpu.matmul %1, %13, %cst_12 {dimension_numbers = #tpu.dot_dimension_numbers<[1], [0], [0], [1], [0, 0, 1, 1], [], []>} : vector<16x16xf32>, vector<16x16xf32>, vector<16x16xf32> -> vector<16x16xf32>
    %17 = arith.addf %15, %16 : vector<16x16xf32>
    %18 = math.tanh %17 : vector<16x16xf32>
    %c0_13 = arith.constant 0 : index
    %c16_14 = arith.constant 16 : index
    %19 = vector.load %arg3[%c0_13, %c16_14] : memref<16x128xf32, #tpu.memory_space<vmem>>, vector<16x16xf32>
    tpu.vector_store %arg3[%c0_13, %c16_14], %18 {strides = array<i32>} : memref<16x128xf32, #tpu.memory_space<vmem>>, vector<16x16xf32>,
    %20 = vector.extract_strided_slice %8 {offsets = [0, 32], sizes = [16, 16], strides = [1, 1]} : vector<16x128xf32> to vector<16x16xf32>
    %cst_15 = arith.constant dense<0.000000e+00> : vector<16x16xf32>
    %21 = tpu.matmul %1, %18, %cst_15 {dimension_numbers = #tpu.dot_dimension_numbers<[1], [0], [0], [1], [0, 0, 1, 1], [], []>} : vector<16x16xf32>, vector<16x16xf32>, vector<16x16xf32> -> vector<16x16xf32>
    %22 = arith.addf %20, %21 : vector<16x16xf32>
    %23 = math.tanh %22 : vector<16x16xf32>
    %c0_16 = arith.constant 0 : index
    %c32 = arith.constant 32 : index
    %24 = vector.load %arg3[%c0_16, %c32] : memref<16x128xf32, #tpu.memory_space<vmem>>, vector<16x16xf32>
    tpu.vector_store %arg3[%c0_16, %c32], %23 {strides = array<i32>} : memref<16x128xf32, #tpu.memory_space<vmem>>, vector<16x16xf32>,
    %25 = vector.extract_strided_slice %8 {offsets = [0, 48], sizes = [16, 16], strides = [1, 1]} : vector<16x128xf32> to vector<16x16xf32>
    %cst_17 = arith.constant dense<0.000000e+00> : vector<16x16xf32>
    %26 = tpu.matmul %1, %23, %cst_17 {dimension_numbers = #tpu.dot_dimension_numbers<[1], [0], [0], [1], [0, 0, 1, 1], [], []>} : vector<16x16xf32>, vector<16x16xf32>, vector<16x16xf32> -> vector<16x16xf32>
    %27 = arith.addf %25, %26 : vector<16x16xf32>
    %28 = math.tanh %27 : vector<16x16xf32>
    %c0_18 = arith.constant 0 : index
    %c48 = arith.constant 48 : index
    %29 = vector.load %arg3[%c0_18, %c48] : memref<16x128xf32, #tpu.memory_space<vmem>>, vector<16x16xf32>
    tpu.vector_store %arg3[%c0_18, %c48], %28 {strides = array<i32>} : memref<16x128xf32, #tpu.memory_space<vmem>>, vector<16x16xf32>,
    %30 = vector.extract_strided_slice %8 {offsets = [0, 64], sizes = [16, 16], strides = [1, 1]} : vector<16x128xf32> to vector<16x16xf32>
    %cst_19 = arith.constant dense<0.000000e+00> : vector<16x16xf32>
    %31 = tpu.matmul %1, %28, %cst_19 {dimension_numbers = #tpu.dot_dimension_numbers<[1], [0], [0], [1], [0, 0, 1, 1], [], []>} : vector<16x16xf32>, vector<16x16xf32>, vector<16x16xf32> -> vector<16x16xf32>
    %32 = arith.addf %30, %31 : vector<16x16xf32>
    %33 = math.tanh %32 : vector<16x16xf32>
    %c0_20 = arith.constant 0 : index
    %c64 = arith.constant 64 : index
    %34 = vector.load %arg3[%c0_20, %c64] : memref<16x128xf32, #tpu.memory_space<vmem>>, vector<16x16xf32>
    tpu.vector_store %arg3[%c0_20, %c64], %33 {strides = array<i32>} : memref<16x128xf32, #tpu.memory_space<vmem>>, vector<16x16xf32>,
    %35 = vector.extract_strided_slice %8 {offsets = [0, 80], sizes = [16, 16], strides = [1, 1]} : vector<16x128xf32> to vector<16x16xf32>
    %cst_21 = arith.constant dense<0.000000e+00> : vector<16x16xf32>
    %36 = tpu.matmul %1, %33, %cst_21 {dimension_numbers = #tpu.dot_dimension_numbers<[1], [0], [0], [1], [0, 0, 1, 1], [], []>} : vector<16x16xf32>, vector<16x16xf32>, vector<16x16xf32> -> vector<16x16xf32>
    %37 = arith.addf %35, %36 : vector<16x16xf32>
    %38 = math.tanh %37 : vector<16x16xf32>
    %c0_22 = arith.constant 0 : index
    %c80 = arith.constant 80 : index
    %39 = vector.load %arg3[%c0_22, %c80] : memref<16x128xf32, #tpu.memory_space<vmem>>, vector<16x16xf32>
    tpu.vector_store %arg3[%c0_22, %c80], %38 {strides = array<i32>} : memref<16x128xf32, #tpu.memory_space<vmem>>, vector<16x16xf32>,
    %40 = vector.extract_strided_slice %8 {offsets = [0, 96], sizes = [16, 16], strides = [1, 1]} : vector<16x128xf32> to vector<16x16xf32>
    %cst_23 = arith.constant dense<0.000000e+00> : vector<16x16xf32>
    %41 = tpu.matmul %1, %38, %cst_23 {dimension_numbers = #tpu.dot_dimension_numbers<[1], [0], [0], [1], [0, 0, 1, 1], [], []>} : vector<16x16xf32>, vector<16x16xf32>, vector<16x16xf32> -> vector<16x16xf32>
    %42 = arith.addf %40, %41 : vector<16x16xf32>
    %43 = math.tanh %42 : vector<16x16xf32>
    %c0_24 = arith.constant 0 : index
    %c96 = arith.constant 96 : index
    %44 = vector.load %arg3[%c0_24, %c96] : memref<16x128xf32, #tpu.memory_space<vmem>>, vector<16x16xf32>
    tpu.vector_store %arg3[%c0_24, %c96], %43 {strides = array<i32>} : memref<16x128xf32, #tpu.memory_space<vmem>>, vector<16x16xf32>,
    %45 = vector.extract_strided_slice %8 {offsets = [0, 112], sizes = [16, 16], strides = [1, 1]} : vector<16x128xf32> to vector<16x16xf32>
    %cst_25 = arith.constant dense<0.000000e+00> : vector<16x16xf32>
    %46 = tpu.matmul %1, %43, %cst_25 {dimension_numbers = #tpu.dot_dimension_numbers<[1], [0], [0], [1], [0, 0, 1, 1], [], []>} : vector<16x16xf32>, vector<16x16xf32>, vector<16x16xf32> -> vector<16x16xf32>
    %47 = arith.addf %45, %46 : vector<16x16xf32>
    %48 = math.tanh %47 : vector<16x16xf32>
    %c0_26 = arith.constant 0 : index
    %c112 = arith.constant 112 : index
    %49 = vector.load %arg3[%c0_26, %c112] : memref<16x128xf32, #tpu.memory_space<vmem>>, vector<16x16xf32>
    tpu.vector_store %arg3[%c0_26, %c112], %48 {strides = array<i32>} : memref<16x128xf32, #tpu.memory_space<vmem>>, vector<16x16xf32>,
    %c0_27 = arith.constant 0 : index
    %c0_28 = arith.constant 0 : index
    %50 = vector.load %arg3[%c0_27, %c0_28] : memref<16x128xf32, #tpu.memory_space<vmem>>, vector<16x128xf32>
    %cst_29 = arith.constant dense<0.000000e+00> : vector<1x128xf32>
    %51 = tpu.matmul %3, %50, %cst_29 {dimension_numbers = #tpu.dot_dimension_numbers<[1], [0], [0], [1], [0, 0, 1, 1], [], []>} : vector<1x16xf32>, vector<16x128xf32>, vector<1x128xf32> -> vector<1x128xf32>
    %52 = vector.broadcast %4 : vector<1x1xf32> to vector<1x128xf32>
    %53 = arith.addf %51, %52 : vector<1x128xf32>
    %c0_30 = arith.constant 0 : index
    %c0_31 = arith.constant 0 : index
    %54 = vector.load %arg2[%c0_30, %c0_31] : memref<1x128xf32, #tpu.memory_space<vmem>>, vector<1x128xf32>
    tpu.vector_store %arg2[%c0_30, %c0_31], %53 {strides = array<i32>} : memref<1x128xf32, #tpu.memory_space<vmem>>, vector<1x128xf32>,
    return
  }
}

</mosaic_0001>

<bundles_post_ra>
// kernel: tpu_custom_call.1
= control target key start
LH: loop header
LB: loop body
LE: loop exit
PB: predicated region body
PF: predicated region fallthrough
CT: control target
= control target key end

     0   :  { %7 = vsyncpa [#allocation4], 0  ;;  %s1461_s0 = inlined_call_operand.hbm [shape: f32[6,128], index: 0, kind: input, shape index: {}]   ;;  %s1462_s1 = inlined_call_operand.hbm [shape: f32[24,128], index: 1, kind: input, shape index: {}]   ;;  %s1463_s2 = inlined_call_operand.hbm [shape: f32[1,128], index: 2, kind: output, shape index: {}]  }
   0x1   :  { %8 = vsyncpa [#allocation7], 0 }
   0x2   :  { %9 = vsyncpa [#allocation5], 0  ;;  %s1308_s9 = smov [#allocation3]   ;;  %s1309_s11 = smov [#allocation6]  }
   0x3   :  { %s16_s10 = sshll.u32 %s1308_s9, 4  ;;  %s25_s12 = sshll.u32 %s1309_s11, 4  ;;  %s17_s10 = int_to_ptr.vmem [resolvable:$true] %s16_s10  ;;  %s1341_s12 = int_to_ptr.vmem [resolvable:$true] %s25_s12 }
   0x4   :  { %s1236_s15 = scalar_lea.hbm %s1461_s0, 128 }
   0x5   :  { %p1237_p0 = scmp.ne.s32.totalorder %s1461_s0, %s1236_s15  ;;  %p1240_p1 = scmp.lt.u32.totalorder %s1236_s15, %s1461_s0 }
   0x7   :  { %p1242_p2 = pnand %p1240_p1, %p1237_p0 }
   0x9   :  { %1245 = shalt.err (!%p1242_p2)
}
   0xa   :  { %s1246_s20 = scalar_lea.vmem %s17_s10, 128  ;;  %p1251_p4 = scmp.lt.s32.totalorder %s17_s10, %s17_s10 }
   0xb   :  { %p1247_p3 = scmp.ne.s32.totalorder %s17_s10, %s1246_s20  ;;  %p1252_p5 = scmp.lt.s32.totalorder %s1246_s20, %s1246_s20 }
   0xd   :  { %p1253_p6 = por %p1252_p5, %p1251_p4 }
   0xf   :  { %p1254_p7 = pnand %p1253_p6, %p1247_p3 }
  0x11   :  { %1257 = shalt.err (!%p1254_p7)
}
  0x12   :  { %19 = dma.hbm_to_vmem [thread:$0]  %s1461_s0, 128, %s17_s10, [#allocation4]  }
  0x13   :  { %s1258_s25 = scalar_lea.hbm %s1462_s1, 384 }
  0x14   :  { %p1259_p8 = scmp.ne.s32.totalorder %s1462_s1, %s1258_s25  ;;  %p1262_p9 = scmp.lt.u32.totalorder %s1258_s25, %s1462_s1 }
  0x16   :  { %p1264_p10 = pnand %p1262_p9, %p1259_p8 }
  0x18   :  { %1267 = shalt.err (!%p1264_p10)
}
  0x19   :  { %s1268_s30 = scalar_lea.vmem %s1341_s12, 384  ;;  %p1273_p12 = scmp.lt.s32.totalorder %s1341_s12, %s1341_s12 }
  0x1a   :  { %p1269_p11 = scmp.ne.s32.totalorder %s1341_s12, %s1268_s30  ;;  %p1274_p13 = scmp.lt.s32.totalorder %s1268_s30, %s1268_s30 }
  0x1c   :  { %p1275_p0 = por %p1274_p13, %p1273_p12 }
  0x1e   :  { %p1276_p1 = pnand %p1275_p0, %p1269_p11 }
  0x20   :  { %1279 = shalt.err (!%p1276_p1)
}
  0x21   :  { %s1310_s0 = smov 128   ;;  %s1311_s3 = smov 8  }
  0x22   :  { %31 = dma.hbm_to_vmem [thread:$0]  %s1462_s1, 384, %s1341_s12, [#allocation7], %s1310_s0, %s1310_s0, %s1311_s3  }
  0x23   :  { %1302 = dma.done.wait [#allocation4], 128  }
  0x24   :  { %1303 = vsyncadd [#allocation4], 4294967168 }
  0x25   :  { %1304 = dma.done.wait [#allocation7], 384  }
  0x26   :  { %1305 = vsyncadd [#allocation7], 4294966912  ;;  %v1312_v0 = vmov 0.0   ;;  %v1313_v1 = vmov 24   ;;  %vm57_vm0 = vcmask 1045504   ;;  %vm52_vm1 = vcmask 48128  }
  0x27   :  { %1062 = vmatprep.subr.mxu1 %v1312_v0  ;;  %1172 = vset.pattern.permute.xlu1 %v1313_v1  ;;  %v38_v2 = vld [vmem:[#allocation6] sm:$0xff]  ;;  %v41_v3 = vld [vmem:[#allocation3] sm:$0x3f]  ;;  %s1314_s6 = smov 120   ;;  %v39_v4 = vld [vmem:[#allocation6 + $0x8] sm:$0xff]  ;;  %vm140_vm2 = vcmask 130048  }
  0x28   :  { %1063 = vmatpush3.msra.mxu1 %v1312_v0  ;;  %136 = vrot.lane.b32.xlu0 %v38_v2, %s1314_s6  ;;  %s1315_s1 = smov 16   ;;  %vm313_vm3 = vcmask 261248   ;;  %s1316_s7 = smov 112   ;;  %vm411_vm4 = vcmask 392448   ;;  %vm509_vm5 = vcmask 523648   ;;  %vm607_vm6 = vcmask 654848  }
  0x29   :  { %1057 = vmatprep.subr.msk.mxu0 %vm57_vm0, %v41_v3  ;;  %1059 = vmatprep.mubr.msk.f32.mxu0 %vm52_vm1, %v38_v2  ;;  %s1317_s8 = smov 32   ;;  %s1318_s9 = smov 96   ;;  %vm705_vm7 = vcmask 786048   ;;  %vm803_vm8 = vcmask 917248   ;;  %vm1323_vm9 = vmmov 0   ;;  %vm901_vm10 = vcmask 1048448  }
  0x2a   :  { %1058 = vmatpush3.msk.msra.mxu0 %vm57_vm0, %v41_v3  ;;  %44 = vperm.xlu1 %1172, %v38_v2   ;;  %s1319_s10 = smov 48   ;;  %s1320_s11 = smov 80  }
  0x2b   :  { %1060 = vmatmul.mubr.msk.f32.vlgmr.msra.gmra.mrb[0].mxu0 %vm52_vm1, %v39_v4  ;;  %s1321_s12 = smov 64   ;;  %s1325_s13 = smov [#allocation8]  }
  0x2c   :  { %138 = vrot.lane.b32.xlu0 %v39_v4, %s1314_s6  ;;  %s990_s14 = sshll.u32 %s1325_s13, 4  ;;  %s991_s14 = int_to_ptr.vmem [resolvable:$true] %s990_s14 }
  0x2d   :  { %s1280_s15 = scalar_lea.vmem %s991_s14, 16  ;;  %s1284_s16 = scalar_lea.vmem %s991_s14, 32 }
  0x2e   :  { %49 = vperm.xlu1 %1172, %v39_v4   ;;  %p1281_p2 = scmp.ne.s32.totalorder %s991_s14, %s1280_s15  ;;  %p1285_p3 = scmp.lt.s32.totalorder %s991_s14, %s991_s14 }
  0x2f   :  { %p1286_p4 = scmp.lt.s32.totalorder %s1284_s16, %s1280_s15 }
  0x31   :  { %p1287_p5 = por %p1286_p4, %p1285_p3 }
  0x33   :  { %p1288_p6 = pnand %p1287_p5, %p1281_p2 }
  0x9a   :  { %v1374_v5 = vpop.permute.xlu0 %136 }
  0x9b   :  { %1064 = vmatprep.mubr.msk.f32.mxu1 %vm140_vm2, %v1374_v5  ;;  %1071 = vmatprep.mubr.msk.f32.mxu0 %vm140_vm2, %v1374_v5 }
  0x9e   :  { %v1380_v6 = vpop.permute.xlu0 %138 }
  0x9f   :  { %1065 = vmatmul.mubr.msk.f32.vlgmr.msra.gmra.mrb[0].mxu1 %vm140_vm2, %v1380_v6 }
  0xa0   :  { %1078 = vmatprep.mubr.msk.f32.mxu1 %vm140_vm2, %v1374_v5 }
  0xa9   :  { %v45_v9 = vpop.permute.xlu1 %44 }
  0xad   :  { %v50_v10 = vpop.permute.xlu1 %49 }
  0xfe   :  { %v1061_v7 = vpop.f32.mrb[0].mxu0 }
  0xff   :  { %v127_v8 = vpop.f32.mrb[1].mxu0  ;;  %v1386_v11 = vadd.f32 %v1061_v7, %v50_v10 }
 0x100   :  { %v1388_v12 = vadd.f32 %v127_v8, %v45_v9 }
 0x172   :  { %v1066_v13 = vpop.f32.mrb[0].mxu1 }
 0x173   :  { %v221_v14 = vadd.f32 %v1066_v13, %v1386_v11  ;;  %v211_v15 = vpop.f32.mrb[1].mxu1 }
 0x174   :  { %v220_v16 = vadd.f32 %v211_v15, %v1388_v12 }
 0x175   :  { %1204 = vtanh.f32 %v221_v14 }
 0x176   :  { %1206 = vtanh.f32 %v220_v16 }
 0x17f   :  { %v1205_v17 = vpop.eup %1204 }
 0x180   :  { %v1207_v18 = vpop.eup %1206  ;;  %225 = vst.msk [vmem:[#allocation2 + $0x8] sm:$0xff] %vm140_vm2, %v1205_v17 }
 0x181   :  { %224 = vst.msk [vmem:[#allocation2] sm:$0xff] %vm140_vm2, %v1207_v18  ;;  %v1123_v19 = vpack.c.bf16 %v1205_v17, %v1207_v18 }
 0x183   :  { %1124 = vmatprep.subr.bf16.mxu0 %v1123_v19 }
 0x184   :  { %1126 = vmatpush3.bf16.msra.mxu0 %v1123_v19 }
 0x187   :  { %1072 = vmatmul.mubr.msk.f32.vlgmr.msra.gmra.mrb[2].mxu0 %vm140_vm2, %v1380_v6 }
 0x188   :  { %1085 = vmatprep.mubr.msk.f32.mxu0 %vm140_vm2, %v1374_v5 }
 0x25a   :  { %v1073_v20 = vpop.f32.mrb[2].mxu0 }
 0x25b   :  { %305 = vrot.lane.b32.xlu1 %v1073_v20, %s1315_s1  ;;  %v292_v21 = vpop.f32.mrb[3].mxu0 }
 0x25c   :  { %303 = vrot.lane.b32.xlu0 %v292_v21, %s1315_s1 }
 0x2cd   :  { %v306_v22 = vpop.permute.xlu1 %305 }
 0x2ce   :  { %v310_v23 = vadd.f32 %v306_v22, %v1386_v11  ;;  %v304_v24 = vpop.permute.xlu0 %303 }
 0x2cf   :  { %v309_v25 = vadd.f32 %v304_v24, %v1388_v12 }
 0x2d0   :  { %1208 = vtanh.f32 %v310_v23 }
 0x2d1   :  { %1210 = vtanh.f32 %v309_v25 }
 0x2da   :  { %v1209_v26 = vpop.eup %1208 }
 0x2db   :  { %v1211_v27 = vpop.eup %1210  ;;  %315 = vst.msk [vmem:[#allocation2 + $0x8] sm:$0xff] %vm313_vm3, %v1209_v26 }
 0x2dc   :  { %314 = vst.msk [vmem:[#allocation2] sm:$0xff] %vm313_vm3, %v1211_v27  ;;  %v1173_v28 = vpack.i.bf16 %v1209_v26, %v1211_v27 }
 0x2de   :  { %1174 = vrot.lane.b32.xlu0 %v1173_v28, %s1316_s7 }
 0x350   :  { %v1175_v29 = vpop.permute.xlu0 %1174 }
 0x351   :  { %v1177_v30 = vunpack.i.h.bf16 %v1175_v29  ;;  %v1176_v31 = vunpack.i.l.bf16 %v1175_v29 }
 0x353   :  { %v1127_v32 = vpack.c.bf16 %v1177_v30, %v1176_v31 }
 0x355   :  { %1128 = vmatprep.subr.bf16.mxu1 %v1127_v32 }
 0x356   :  { %1130 = vmatpush3.bf16.msra.mxu1 %v1127_v32 }
 0x359   :  { %1079 = vmatmul.mubr.msk.f32.vlgmr.msra.gmra.mrb[2].mxu1 %vm140_vm2, %v1380_v6 }
 0x35a   :  { %1092 = vmatprep.mubr.msk.f32.mxu1 %vm140_vm2, %v1374_v5 }
 0x42c   :  { %v1080_v33 = vpop.f32.mrb[2].mxu1 }
 0x42d   :  { %403 = vrot.lane.b32.xlu0 %v1080_v33, %s1317_s8  ;;  %v390_v34 = vpop.f32.mrb[3].mxu1 }
 0x42e   :  { %401 = vrot.lane.b32.xlu1 %v390_v34, %s1317_s8 }
 0x49f   :  { %v404_v35 = vpop.permute.xlu0 %403 }
 0x4a0   :  { %v408_v36 = vadd.f32 %v404_v35, %v1386_v11  ;;  %v402_v37 = vpop.permute.xlu1 %401 }
 0x4a1   :  { %v407_v38 = vadd.f32 %v402_v37, %v1388_v12 }
 0x4a2   :  { %1212 = vtanh.f32 %v408_v36 }
 0x4a3   :  { %1214 = vtanh.f32 %v407_v38  ;;  %v1322_v38 = vmov 0.0|0.0  }
 0x4ac   :  { %v1213_v39 = vpop.eup %1212 }
 0x4ad   :  { %v1215_v40 = vpop.eup %1214  ;;  %413 = vst.msk [vmem:[#allocation2 + $0x8] sm:$0xff] %vm411_vm4, %v1213_v39 }
 0x4ae   :  { %412 = vst.msk [vmem:[#allocation2] sm:$0xff] %vm411_vm4, %v1215_v40  ;;  %v1178_v41 = vpack.i.bf16 %v1213_v39, %v1215_v40 }
 0x4b0   :  { %1179 = vrot.lane.b32.xlu1 %v1178_v41, %s1318_s9  ;;  %v40_v41 = vld [vmem:[#allocation6 + $0x10] sm:$0x1] }
 0x522   :  { %v1180_v42 = vpop.permute.xlu1 %1179 }
 0x523   :  { %v1182_v43 = vunpack.i.h.bf16 %v1180_v42  ;;  %v1181_v44 = vunpack.i.l.bf16 %v1180_v42  ;;  %v1324_v42 = vmov 16  }
 0x524   :  { %1203 = vset.pattern.permute.xlu0 %v1324_v42 }
 0x525   :  { %v1131_v45 = vpack.c.bf16 %v1182_v43, %v1181_v44 }
 0x527   :  { %1132 = vmatprep.subr.bf16.mxu0 %v1131_v45 }
 0x528   :  { %1134 = vmatpush3.bf16.msra.mxu0 %v1131_v45 }
 0x52b   :  { %1086 = vmatmul.mubr.msk.f32.vlgmr.msra.gmra.mrb[4].mxu0 %vm140_vm2, %v1380_v6 }
 0x52c   :  { %1099 = vmatprep.mubr.msk.f32.mxu0 %vm140_vm2, %v1374_v5 }
 0x5fe   :  { %v1087_v46 = vpop.f32.mrb[4].mxu0 }
 0x5ff   :  { %501 = vrot.lane.b32.xlu1 %v1087_v46, %s1319_s10  ;;  %v488_v47 = vpop.f32.mrb[5].mxu0 }
 0x600   :  { %499 = vrot.lane.b32.xlu0 %v488_v47, %s1319_s10 }
 0x671   :  { %v502_v48 = vpop.permute.xlu1 %501 }
 0x672   :  { %v506_v49 = vadd.f32 %v502_v48, %v1386_v11  ;;  %v500_v50 = vpop.permute.xlu0 %499 }
 0x673   :  { %v505_v51 = vadd.f32 %v500_v50, %v1388_v12 }
 0x674   :  { %1216 = vtanh.f32 %v506_v49 }
 0x675   :  { %1218 = vtanh.f32 %v505_v51 }
 0x67e   :  { %v1217_v52 = vpop.eup %1216 }
 0x67f   :  { %v1219_v53 = vpop.eup %1218  ;;  %511 = vst.msk [vmem:[#allocation2 + $0x8] sm:$0xff] %vm509_vm5, %v1217_v52 }
 0x680   :  { %510 = vst.msk [vmem:[#allocation2] sm:$0xff] %vm509_vm5, %v1219_v53  ;;  %v1183_v54 = vpack.i.bf16 %v1217_v52, %v1219_v53 }
 0x682   :  { %1184 = vrot.lane.b32.xlu0 %v1183_v54, %s1320_s11 }
 0x6f4   :  { %v1185_v55 = vpop.permute.xlu0 %1184 }
 0x6f5   :  { %v1187_v56 = vunpack.i.h.bf16 %v1185_v55  ;;  %v1186_v57 = vunpack.i.l.bf16 %v1185_v55 }
 0x6f7   :  { %v1135_v58 = vpack.c.bf16 %v1187_v56, %v1186_v57 }
 0x6f9   :  { %1136 = vmatprep.subr.bf16.mxu1 %v1135_v58 }
 0x6fa   :  { %1138 = vmatpush3.bf16.msra.mxu1 %v1135_v58 }
 0x6fd   :  { %1093 = vmatmul.mubr.msk.f32.vlgmr.msra.gmra.mrb[4].mxu1 %vm140_vm2, %v1380_v6 }
 0x6fe   :  { %1106 = vmatprep.mubr.msk.f32.mxu1 %vm140_vm2, %v1374_v5 }
 0x7d0   :  { %v1094_v59 = vpop.f32.mrb[4].mxu1 }
 0x7d1   :  { %599 = vrot.lane.b32.xlu0 %v1094_v59, %s1321_s12  ;;  %v586_v60 = vpop.f32.mrb[5].mxu1 }
 0x7d2   :  { %597 = vrot.lane.b32.xlu1 %v586_v60, %s1321_s12 }
 0x843   :  { %v600_v61 = vpop.permute.xlu0 %599 }
 0x844   :  { %v604_v62 = vadd.f32 %v600_v61, %v1386_v11  ;;  %v598_v63 = vpop.permute.xlu1 %597 }
 0x845   :  { %v603_v1 = vadd.f32 %v598_v63, %v1388_v12 }
 0x846   :  { %1220 = vtanh.f32 %v604_v62 }
 0x847   :  { %1222 = vtanh.f32 %v603_v1 }
 0x850   :  { %v1221_v2 = vpop.eup %1220 }
 0x851   :  { %v1223_v3 = vpop.eup %1222  ;;  %609 = vst.msk [vmem:[#allocation2 + $0x8] sm:$0xff] %vm607_vm6, %v1221_v2 }
 0x852   :  { %608 = vst.msk [vmem:[#allocation2] sm:$0xff] %vm607_vm6, %v1223_v3  ;;  %v1188_v4 = vpack.i.bf16 %v1221_v2, %v1223_v3 }
 0x854   :  { %1189 = vrot.lane.b32.xlu1 %v1188_v4, %s1321_s12 }
 0x8c6   :  { %v1190_v7 = vpop.permute.xlu1 %1189 }
 0x8c7   :  { %v1192_v8 = vunpack.i.h.bf16 %v1190_v7  ;;  %v1191_v9 = vunpack.i.l.bf16 %v1190_v7 }
 0x8c9   :  { %v1139_v10 = vpack.c.bf16 %v1192_v8, %v1191_v9 }
 0x8cb   :  { %1140 = vmatprep.subr.bf16.mxu0 %v1139_v10 }
 0x8cc   :  { %1142 = vmatpush3.bf16.msra.mxu0 %v1139_v10 }
 0x8cf   :  { %1100 = vmatmul.mubr.msk.f32.vlgmr.msra.gmra.mrb[6].mxu0 %vm140_vm2, %v1380_v6 }
 0x8d0   :  { %1113 = vmatprep.mubr.msk.f32.mxu0 %vm140_vm2, %v1374_v5 }
 0x9a2   :  { %v1101_v13 = vpop.f32.mrb[6].mxu0 }
 0x9a3   :  { %697 = vrot.lane.b32.xlu1 %v1101_v13, %s1320_s11  ;;  %v684_v14 = vpop.f32.mrb[7].mxu0 }
 0x9a4   :  { %695 = vrot.lane.b32.xlu0 %v684_v14, %s1320_s11 }
 0xa15   :  { %v698_v15 = vpop.permute.xlu1 %697 }
 0xa16   :  { %v702_v16 = vadd.f32 %v698_v15, %v1386_v11  ;;  %v696_v17 = vpop.permute.xlu0 %695 }
 0xa17   :  { %v701_v18 = vadd.f32 %v696_v17, %v1388_v12 }
 0xa18   :  { %1224 = vtanh.f32 %v702_v16 }
 0xa19   :  { %1226 = vtanh.f32 %v701_v18 }
 0xa22   :  { %v1225_v19 = vpop.eup %1224 }
 0xa23   :  { %v1227_v20 = vpop.eup %1226  ;;  %707 = vst.msk [vmem:[#allocation2 + $0x8] sm:$0xff] %vm705_vm7, %v1225_v19 }
 0xa24   :  { %706 = vst.msk [vmem:[#allocation2] sm:$0xff] %vm705_vm7, %v1227_v20  ;;  %v1193_v5 = vpack.i.bf16 %v1225_v19, %v1227_v20 }
 0xa26   :  { %1194 = vrot.lane.b32.xlu0 %v1193_v5, %s1319_s10 }
 0xa98   :  { %v1195_v21 = vpop.permute.xlu0 %1194 }
 0xa99   :  { %v1197_v22 = vunpack.i.h.bf16 %v1195_v21  ;;  %v1196_v23 = vunpack.i.l.bf16 %v1195_v21 }
 0xa9b   :  { %v1143_v24 = vpack.c.bf16 %v1197_v22, %v1196_v23 }
 0xa9d   :  { %1144 = vmatprep.subr.bf16.mxu1 %v1143_v24 }
 0xa9e   :  { %1146 = vmatpush3.bf16.msra.mxu1 %v1143_v24 }
 0xa9f   :  { %1151 = vmatprep.subr.bf16.mxu1 %v1322_v38 }
 0xaa1   :  { %1107 = vmatmul.mubr.msk.f32.vlgmr.msra.gmra.mrb[6].mxu1 %vm140_vm2, %v1380_v6 }
 0xaa2   :  { %1120 = vmatprep.mubr.msk.f32.mxu1 %vm1323_vm9, %v1312_v0 }
 0xb74   :  { %v1108_v25 = vpop.f32.mrb[6].mxu1 }
 0xb75   :  { %795 = vrot.lane.b32.xlu0 %v1108_v25, %s1318_s9  ;;  %v782_v26 = vpop.f32.mrb[7].mxu1 }
 0xb76   :  { %793 = vrot.lane.b32.xlu1 %v782_v26, %s1318_s9 }
 0xbe7   :  { %v796_v27 = vpop.permute.xlu0 %795 }
 0xbe8   :  { %v800_v28 = vadd.f32 %v796_v27, %v1386_v11  ;;  %v794_v29 = vpop.permute.xlu1 %793 }
 0xbe9   :  { %v799_v30 = vadd.f32 %v794_v29, %v1388_v12 }
 0xbea   :  { %1228 = vtanh.f32 %v800_v28 }
 0xbeb   :  { %1230 = vtanh.f32 %v799_v30 }
 0xbf4   :  { %v1229_v31 = vpop.eup %1228 }
 0xbf5   :  { %v1231_v32 = vpop.eup %1230  ;;  %805 = vst.msk [vmem:[#allocation2 + $0x8] sm:$0xff] %vm803_vm8, %v1229_v31 }
 0xbf6   :  { %v1198_v33 = vpack.i.bf16 %v1229_v31, %v1231_v32  ;;  %804 = vst.msk [vmem:[#allocation2] sm:$0xff] %vm803_vm8, %v1231_v32 }
 0xbf8   :  { %1199 = vrot.lane.b32.xlu1 %v1198_v33, %s1317_s8 }
 0xc6a   :  { %v1200_v34 = vpop.permute.xlu1 %1199 }
 0xc6b   :  { %v1202_v35 = vunpack.i.h.bf16 %v1200_v34  ;;  %v1201_v36 = vunpack.i.l.bf16 %v1200_v34 }
 0xc6d   :  { %v1147_v37 = vpack.c.bf16 %v1202_v35, %v1201_v36 }
 0xc6f   :  { %1148 = vmatprep.subr.bf16.mxu0 %v1147_v37 }
 0xc70   :  { %1150 = vmatpush3.bf16.msra.mxu0 %v1147_v37 }
 0xc73   :  { %1114 = vmatmul.mubr.msk.f32.vlgmr.msra.gmra.mrb[8].mxu0 %vm140_vm2, %v1380_v6 }
 0xd46   :  { %v1115_v39 = vpop.f32.mrb[8].mxu0 }
 0xd47   :  { %893 = vrot.lane.b32.xlu1 %v1115_v39, %s1316_s7  ;;  %v880_v40 = vpop.f32.mrb[9].mxu0 }
 0xd48   :  { %891 = vrot.lane.b32.xlu0 %v880_v40, %s1316_s7 }
 0xd4c   :  { %908 = vperm.xlu0 %1203, %v40_v41  }
 0xdb9   :  { %v894_v43 = vpop.permute.xlu1 %893 }
 0xdba   :  { %v898_v44 = vadd.f32 %v894_v43, %v1386_v11  ;;  %v892_v45 = vpop.permute.xlu0 %891 }
 0xdbb   :  { %v897_v6 = vadd.f32 %v892_v45, %v1388_v12 }
 0xdbc   :  { %1232 = vtanh.f32 %v898_v44 }
 0xdbd   :  { %1234 = vtanh.f32 %v897_v6 }
 0xdc6   :  { %v1233_v46 = vpop.eup %1232 }
 0xdc7   :  { %v1235_v47 = vpop.eup %1234  ;;  %903 = vst.msk [vmem:[#allocation2 + $0x8] sm:$0xff] %vm901_vm10, %v1233_v46 }
 0xdc8   :  { %902 = vst.msk [vmem:[#allocation2] sm:$0xff] %vm901_vm10, %v1235_v47 }
 0xdcb   :  { %v909_v50 = vpop.permute.xlu0 %908 }
 0xdce   :  { %v905_v48 = vld [vmem:[#allocation2 + $0x8] sm:$0xff] }
 0xdcf   :  { %v904_v49 = vld [vmem:[#allocation2] sm:$0xff] }
 0xdd0   :  { %v1152_v0 = vpack.c.bf16 %v905_v48, %v904_v49 }
 0xdd2   :  { %1153 = vmatpush3.bf16.msra.mxu1 %v1152_v0 }
 0xdd5   :  { %1121 = vmatmul.mubr.msk.f32.vlgmr.msra.gmra.mrb[8].mxu1 %vm140_vm2, %v40_v41 }
 0xea8   :  { %v979_v11 = vpop.f32.mrb[8].mxu1 }
 0xea9   :  { %v980_v51 = vadd.f32 %v979_v11, %v909_v50  ;;  %v1122_v52 = vpop.f32.mrb[9].mxu1 }
 0xeab   :  { %983 = vst [vmem:[#allocation8] sm:$0x1] %v980_v51 }
 0xeac   :  { %1291 = shalt.err (!%p1288_p6)
}
 0xead   :  { %s1292_s19 = scalar_lea.hbm %s1463_s2, 16 }
 0xeae   :  { %p1293_p7 = scmp.ne.s32.totalorder %s1463_s2, %s1292_s19  ;;  %p1296_p8 = scmp.lt.u32.totalorder %s1292_s19, %s1463_s2 }
 0xeb0   :  { %p1298_p9 = pnand %p1296_p8, %p1293_p7 }
 0xeb2   :  { %1301 = shalt.err (!%p1298_p9)
}
 0xeb3   :  { %993 = dma.vmem_to_hbm [thread:$0]  %s991_s14, 16, %s1463_s2, [#allocation5]  }
 0xeb4   :  { %1306 = dma.done.wait [#allocation5], 16  }
 0xeb5   :  { %1307 = vsyncadd [#allocation5], 4294967280 }
 0xeb6   :  { %997 = vsyncpa [#allocation4], 1 }
 0xeb7   :  { %998 = vsyncpa [#allocation7], 1 }
 0xeb8   :  { %999 = vsyncpa [#allocation5], 1 }

</bundles_post_ra>
